<compile_context>
chip_gen: v5e
topology: v5e:2x2
jax: 0.10.0
libtpu: 0.0.40
codegen_flags: <defaults>
</compile_context>

<pallas_src>
import math
from functools import partial

import jax
import jax.numpy as jnp
from jax.experimental import pallas as pl
from jax.experimental.pallas import tpu as pltpu


# ----------------------------- Pallas kernels ------------------------------ #

def _gcn_kernel_3d(inp_ref, adj_ref, w_ref, b_ref, out_ref, *, is_relu):
    # inp_ref: [TB, S, H], adj_ref: [TB, S, S], w_ref: [H, H2], b_ref: [1,1,H2]
    tb, s, hdim = inp_ref.shape
    h2 = w_ref.shape[1]
    x2 = inp_ref[...].reshape(tb * s, hdim)                       # [TB*S, H]
    h = jnp.dot(x2, w_ref[...], preferred_element_type=jnp.float32)
    h = h.reshape(tb, s, h2).astype(adj_ref.dtype)                # [TB, S, H2]
    o = jnp.einsum("bij,bjh->bih", adj_ref[...], h,
                   preferred_element_type=jnp.float32) + b_ref[...]
    if is_relu:
        o = jnp.maximum(o, 0.0)
    out_ref[...] = o.astype(out_ref.dtype)


def _gcn_kernel_4d(inp_ref, adj_ref, w0_ref, w1_ref, b_ref, out_ref, *, is_relu):
    # inp_ref: [TB, S, H], adj_ref: [2, TB, S, S] (both heads),
    # w0_ref/w1_ref: [H, H2] (linear_gcn folded in), b_ref: [1, 1, H2] (f32).
    tb, s, hdim = inp_ref.shape
    h2 = w0_ref.shape[1]
    x2 = inp_ref[...].reshape(tb * s, hdim)                       # [TB*S, H]
    h0 = jnp.dot(x2, w0_ref[...], preferred_element_type=jnp.float32)
    h1 = jnp.dot(x2, w1_ref[...], preferred_element_type=jnp.float32)
    h0 = h0.reshape(tb, s, h2).astype(adj_ref.dtype)
    h1 = h1.reshape(tb, s, h2).astype(adj_ref.dtype)
    adj0 = adj_ref[0]                                             # [TB, S, S]
    adj1 = adj_ref[1]
    y = (jnp.einsum("bij,bjh->bih", adj0, h0,
                    preferred_element_type=jnp.float32)
         + jnp.einsum("bij,bjh->bih", adj1, h1,
                      preferred_element_type=jnp.float32)
         + b_ref[...])
    if is_relu:
        y = jnp.maximum(y, 0.0)
    out_ref[...] = y.astype(out_ref.dtype)


# ------------------------------- Wrapper ----------------------------------- #

def _pick_block_b(b, target=8):
    """Largest divisor of b that is <= target, keeping >= 2 grid steps when
    b >= 2 (so dual-TC chips get at least one step per core)."""
    best = 1
    for d in range(1, min(b, target) + 1):
        if b % d == 0 and (b // d >= 2 or b == 1):
            best = d
    return best


def gcn_forward(inp, adj, params, is_relu=True,
                compute_dtype=jnp.float32, block_b=None):
    B, S, H = inp.shape
    H2 = H // 2
    TB = block_b if block_b is not None else _pick_block_b(B)
    assert B % TB == 0, "block_b must divide the batch size"
    grid = (B // TB,)
    itemsize = jnp.dtype(compute_dtype).itemsize

    inp_c = inp.astype(compute_dtype)
    adj_c = adj.astype(compute_dtype)
    W = params["W"].astype(jnp.float32)
    b = params["b"].astype(jnp.float32)

    if adj.ndim > 3:
        assert adj.shape[0] == 2, "linear_gcn expects exactly 2 adjacency heads"
        # Fold linear_gcn into the graph-conv weights (done once, host-side,
        # in f32 / highest precision):
        #   y = adj0 @ (x @ W0) + adj1 @ (x @ W1) + bias'
        WgT = params["Wg"].T.astype(jnp.float32)           # [H, H2]
        bg = params["bg"].astype(jnp.float32)
        WgT_top, WgT_bot = WgT[:H2], WgT[H2:]
        W0 = jnp.matmul(W, WgT_top, precision="highest").astype(compute_dtype)
        W1 = jnp.matmul(W, WgT_bot, precision="highest").astype(compute_dtype)
        bias = (jnp.matmul(b, WgT_top, precision="highest")
                + jnp.matmul(b, WgT_bot, precision="highest")
                + bg).reshape(1, 1, H2)                    # f32

        flops = 2 * B * (2 * S * H * H2 + 2 * S * S * H2)
        bytes_accessed = ((B * S * H + 2 * B * S * S) * itemsize
                          + B * S * H2 * 4
                          + 2 * H * H2 * itemsize + H2 * 4)

        grid_spec = pltpu.PrefetchScalarGridSpec(
            num_scalar_prefetch=0,
            grid=grid,
            in_specs=[
                pl.BlockSpec((TB, S, H), lambda i: (i, 0, 0)),       # inp
                pl.BlockSpec((2, TB, S, S), lambda i: (0, i, 0, 0)), # both adj heads
                pl.BlockSpec((H, H2), lambda i: (0, 0)),             # W0
                pl.BlockSpec((H, H2), lambda i: (0, 0)),             # W1
                pl.BlockSpec((1, 1, H2), lambda i: (0, 0, 0)),       # folded bias
            ],
            out_specs=pl.BlockSpec((TB, S, H2), lambda i: (i, 0, 0)),
        )
        return pl.pallas_call(
            partial(_gcn_kernel_4d, is_relu=is_relu),
            out_shape=jax.ShapeDtypeStruct((B, S, H2), jnp.float32),
            grid_spec=grid_spec,
            compiler_params=pltpu.CompilerParams(
                dimension_semantics=("parallel",)),
            cost_estimate=pl.CostEstimate(
                flops=flops, transcendentals=0, bytes_accessed=bytes_accessed),
        )(inp_c, adj_c, W0, W1, bias)
    else:
        W_c = W.astype(compute_dtype)
        bias = b.reshape(1, 1, H2)                         # f32

        flops = 2 * B * (S * H * H2 + S * S * H2)
        bytes_accessed = ((B * S * H + B * S * S) * itemsize
                          + B * S * H2 * 4
                          + H * H2 * itemsize + H2 * 4)

        grid_spec = pltpu.PrefetchScalarGridSpec(
            num_scalar_prefetch=0,
            grid=grid,
            in_specs=[
                pl.BlockSpec((TB, S, H), lambda i: (i, 0, 0)),   # inp
                pl.BlockSpec((TB, S, S), lambda i: (i, 0, 0)),   # adj
                pl.BlockSpec((H, H2), lambda i: (0, 0)),         # W
                pl.BlockSpec((1, 1, H2), lambda i: (0, 0, 0)),   # b
            ],
            out_specs=pl.BlockSpec((TB, S, H2), lambda i: (i, 0, 0)),
        )
        return pl.pallas_call(
            partial(_gcn_kernel_3d, is_relu=is_relu),
            out_shape=jax.ShapeDtypeStruct((B, S, H2), jnp.float32),
            grid_spec=grid_spec,
            compiler_params=pltpu.CompilerParams(
                dimension_semantics=("parallel",)),
            cost_estimate=pl.CostEstimate(
                flops=flops, transcendentals=0, bytes_accessed=bytes_accessed),
        )(inp_c, adj_c, W_c, bias)


# Pure-JAX reference (mirrors the PyTorch forward exactly) for validation.
def gcn_ref(inp, adj, params, is_relu=True):
    h = inp @ params["W"]
    out = jnp.matmul(adj, h) + params["b"]
    B, S, _ = h.shape
    if adj.ndim > 3:
        out = jnp.transpose(out, (1, 0, 2, 3))   # transpose(0,1): [B, K, S, H/2]
        out = jnp.transpose(out, (0, 2, 1, 3))   # transpose(1,2): [B, S, K, H/2]
        out = out.reshape(B, S, -1)              # view(B, S, -1)
        out = out @ params["Wg"].T + params["bg"]
    if is_relu:
        out = jnp.maximum(out, 0.0)
    return out


# ------------------------------ Entry point --------------------------------- #

if __name__ == "__main__":
    B, S, H = 2, 8, 32           # batch, seq_len, HP_hidden_dim
    H2 = H // 2

    key = jax.random.PRNGKey(0)
    k_inp, k_adj, k_w, k_b, k_wg, k_bg = jax.random.split(key, 6)

    inp = jax.random.normal(k_inp, (B, S, H), dtype=jnp.float32)
    adj4 = jax.random.uniform(k_adj, (2, B, S, S), dtype=jnp.float32)
    adj3 = adj4[0]

    # Deterministic parameter init (same distributions as the module's init()).
    stdv = 1.0 / math.sqrt(H2)
    params = {
        "W": jax.random.uniform(k_w, (H, H2), minval=-stdv, maxval=stdv,
                                dtype=jnp.float32),
        "b": jax.random.uniform(k_b, (H2,), minval=-stdv, maxval=stdv,
                                dtype=jnp.float32),
        # linear_gcn: Linear(H, H/2) -> weight [H/2, H], bias [H/2]
        "Wg": jax.random.uniform(k_wg, (H2, H), minval=-stdv, maxval=stdv,
                                 dtype=jnp.float32),
        "bg": jax.random.uniform(k_bg, (H2,), minval=-stdv, maxval=stdv,
                                 dtype=jnp.float32),
    }

    # ---- f32 compute path: tight correctness check vs. the reference ----
    out4 = jax.block_until_ready(
        gcn_forward(inp, adj4, params, is_relu=True, compute_dtype=jnp.float32))
    ref4 = gcn_ref(inp, adj4, params, is_relu=True)
    assert out4.shape == (B, S, H2)
    assert jnp.allclose(out4, ref4, atol=1e-4, rtol=1e-4)

    out3 = jax.block_until_ready(
        gcn_forward(inp, adj3, params, is_relu=True, compute_dtype=jnp.float32))
    ref3 = gcn_ref(inp, adj3, params, is_relu=True)
    assert out3.shape == (B, S, H2)
    assert jnp.allclose(out3, ref3, atol=1e-4, rtol=1e-4)

    out3_nr = jax.block_until_ready(
        gcn_forward(inp, adj3, params, is_relu=False, compute_dtype=jnp.float32))
    ref3_nr = gcn_ref(inp, adj3, params, is_relu=False)
    assert jnp.allclose(out3_nr, ref3_nr, atol=1e-4, rtol=1e-4)

    # ---- bf16 compute path (HBM/MXU-optimized): loose tolerance vs f32 ref ----
    out4_bf = jax.block_until_ready(
        gcn_forward(inp, adj4, params, is_relu=True, compute_dtype=jnp.bfloat16))
    assert jnp.allclose(out4_bf, ref4, atol=5e-2, rtol=5e-2)

    out3_bf = jax.block_until_ready(
        gcn_forward(inp, adj3, params, is_relu=True, compute_dtype=jnp.bfloat16))
    assert jnp.allclose(out3_bf, ref3, atol=5e-2, rtol=5e-2)

    print("KERNEL_OK")
</pallas_src>

<mosaic_0001>
module attributes {stable_mosaic.version = 11 : i64} {
  func.func @_gcn_kernel_4d(%arg0: i32, %arg1: memref<1x8x32xf32, #tpu.memory_space<vmem>>, %arg2: memref<2x1x8x8xf32, #tpu.memory_space<vmem>>, %arg3: memref<32x16xf32, #tpu.memory_space<vmem>>, %arg4: memref<32x16xf32, #tpu.memory_space<vmem>>, %arg5: memref<1x1x16xf32, #tpu.memory_space<vmem>>, %arg6: memref<1x8x16xf32, #tpu.memory_space<vmem>>) attributes {dimension_semantics = [#tpu.dimension_semantics<parallel>], iteration_bounds = array<i64: 2>, scalar_prefetch = 0 : i64, scratch_operands = 0 : i64, tpu.core_type = #tpu.core_type<tc>, window_params = [{transform_indices = @transform_0, window_bounds = array<i64: 1, 8, 32>}, {transform_indices = @transform_1, window_bounds = array<i64: 2, 1, 8, 8>}, {pipeline_mode = #tpu.pipeline_mode<synchronous>, transform_indices = @transform_2, window_bounds = array<i64: 32, 16>}, {pipeline_mode = #tpu.pipeline_mode<synchronous>, transform_indices = @transform_3, window_bounds = array<i64: 32, 16>}, {pipeline_mode = #tpu.pipeline_mode<synchronous>, transform_indices = @transform_4, window_bounds = array<i64: 1, 1, 16>}, {transform_indices = @transform_5, window_bounds = array<i64: 1, 8, 16>}]} {
    %c0 = arith.constant 0 : index
    %c0_0 = arith.constant 0 : index
    %c0_1 = arith.constant 0 : index
    %0 = vector.load %arg1[%c0, %c0_0, %c0_1] : memref<1x8x32xf32, #tpu.memory_space<vmem>>, vector<1x8x32xf32>
    %1 = vector.shape_cast %0 : vector<1x8x32xf32> to vector<8x32xf32>
    %c0_2 = arith.constant 0 : index
    %c0_3 = arith.constant 0 : index
    %2 = vector.load %arg3[%c0_2, %c0_3] : memref<32x16xf32, #tpu.memory_space<vmem>>, vector<32x16xf32>
    %cst = arith.constant dense<0.000000e+00> : vector<8x16xf32>
    %3 = tpu.matmul %1, %2, %cst {dimension_numbers = #tpu.dot_dimension_numbers<[1], [0], [0], [1], [0, 0, 1, 1], [], []>} : vector<8x32xf32>, vector<32x16xf32>, vector<8x16xf32> -> vector<8x16xf32>
    %c0_4 = arith.constant 0 : index
    %c0_5 = arith.constant 0 : index
    %4 = vector.load %arg4[%c0_4, %c0_5] : memref<32x16xf32, #tpu.memory_space<vmem>>, vector<32x16xf32>
    %cst_6 = arith.constant dense<0.000000e+00> : vector<8x16xf32>
    %5 = tpu.matmul %1, %4, %cst_6 {dimension_numbers = #tpu.dot_dimension_numbers<[1], [0], [0], [1], [0, 0, 1, 1], [], []>} : vector<8x32xf32>, vector<32x16xf32>, vector<8x16xf32> -> vector<8x16xf32>
    %6 = vector.shape_cast %3 : vector<8x16xf32> to vector<1x8x16xf32>
    %7 = vector.shape_cast %5 : vector<8x16xf32> to vector<1x8x16xf32>
    %c0_7 = arith.constant 0 : index
    %c0_8 = arith.constant 0 : index
    %c0_9 = arith.constant 0 : index
    %c0_10 = arith.constant 0 : index
    %8 = vector.load %arg2[%c0_7, %c0_8, %c0_9, %c0_10] : memref<2x1x8x8xf32, #tpu.memory_space<vmem>>, vector<1x1x8x8xf32>
    %9 = vector.shape_cast %8 : vector<1x1x8x8xf32> to vector<1x8x8xf32>
    %c1 = arith.constant 1 : index
    %c0_11 = arith.constant 0 : index
    %c0_12 = arith.constant 0 : index
    %c0_13 = arith.constant 0 : index
    %10 = vector.load %arg2[%c1, %c0_11, %c0_12, %c0_13] : memref<2x1x8x8xf32, #tpu.memory_space<vmem>>, vector<1x1x8x8xf32>
    %11 = vector.shape_cast %10 : vector<1x1x8x8xf32> to vector<1x8x8xf32>
    "tpu.trace_start"() <{level = 10 : i32, message = "bij,bjh->bih"}> : () -> ()
    %cst_14 = arith.constant dense<0.000000e+00> : vector<1x8x16xf32>
    %12 = tpu.matmul %9, %6, %cst_14 {dimension_numbers = #tpu.dot_dimension_numbers<[2], [1], [1], [2], [0, 0, 0, 1, 1, 2], [0], [0]>} : vector<1x8x8xf32>, vector<1x8x16xf32>, vector<1x8x16xf32> -> vector<1x8x16xf32>
    %cst_15 = arith.constant dense<0.000000e+00> : vector<1x8x16xf32>
    %13 = tpu.matmul %11, %7, %cst_15 {dimension_numbers = #tpu.dot_dimension_numbers<[2], [1], [1], [2], [0, 0, 0, 1, 1, 2], [0], [0]>} : vector<1x8x8xf32>, vector<1x8x16xf32>, vector<1x8x16xf32> -> vector<1x8x16xf32>
    "tpu.trace_stop"() : () -> ()
    %14 = arith.addf %12, %13 : vector<1x8x16xf32>
    %c0_16 = arith.constant 0 : index
    %c0_17 = arith.constant 0 : index
    %c0_18 = arith.constant 0 : index
    %15 = vector.load %arg5[%c0_16, %c0_17, %c0_18] : memref<1x1x16xf32, #tpu.memory_space<vmem>>, vector<1x1x16xf32>
    %16 = vector.broadcast %15 : vector<1x1x16xf32> to vector<1x8x16xf32>
    %17 = arith.addf %14, %16 : vector<1x8x16xf32>
    %cst_19 = arith.constant 0.000000e+00 : f32
    %18 = vector.broadcast %cst_19 : f32 to vector<1x8x16xf32>
    %19 = arith.maximumf %17, %18 : vector<1x8x16xf32>
    %c0_20 = arith.constant 0 : index
    %c0_21 = arith.constant 0 : index
    %c0_22 = arith.constant 0 : index
    %20 = vector.load %arg6[%c0_20, %c0_21, %c0_22] : memref<1x8x16xf32, #tpu.memory_space<vmem>>, vector<1x8x16xf32>
    tpu.vector_store %arg6[%c0_20, %c0_21, %c0_22], %19 {strides = array<i32>} : memref<1x8x16xf32, #tpu.memory_space<vmem>>, vector<1x8x16xf32>,
    return
  }
  func.func @transform_0(%arg0: i32) -> (i32, i32, i32) {
    %c0_i32 = arith.constant 0 : i32
    %c0_i32_0 = arith.constant 0 : i32
    %c0_i32_1 = arith.constant 0 : i32
    return %arg0, %c0_i32, %c0_i32_0 : i32, i32, i32
  }
  func.func @transform_1(%arg0: i32) -> (i32, i32, i32, i32) {
    %c0_i32 = arith.constant 0 : i32
    %c0_i32_0 = arith.constant 0 : i32
    %c0_i32_1 = arith.constant 0 : i32
    %c0_i32_2 = arith.constant 0 : i32
    return %c0_i32, %arg0, %c0_i32_0, %c0_i32_1 : i32, i32, i32, i32
  }
  func.func @transform_2(%arg0: i32) -> (i32, i32) {
    %c0_i32 = arith.constant 0 : i32
    %c0_i32_0 = arith.constant 0 : i32
    %c0_i32_1 = arith.constant 0 : i32
    return %c0_i32, %c0_i32_0 : i32, i32
  }
  func.func @transform_3(%arg0: i32) -> (i32, i32) {
    %c0_i32 = arith.constant 0 : i32
    %c0_i32_0 = arith.constant 0 : i32
    %c0_i32_1 = arith.constant 0 : i32
    return %c0_i32, %c0_i32_0 : i32, i32
  }
  func.func @transform_4(%arg0: i32) -> (i32, i32, i32) {
    %c0_i32 = arith.constant 0 : i32
    %c0_i32_0 = arith.constant 0 : i32
    %c0_i32_1 = arith.constant 0 : i32
    %c0_i32_2 = arith.constant 0 : i32
    return %c0_i32, %c0_i32_0, %c0_i32_1 : i32, i32, i32
  }
  func.func @transform_5(%arg0: i32) -> (i32, i32, i32) {
    %c0_i32 = arith.constant 0 : i32
    %c0_i32_0 = arith.constant 0 : i32
    %c0_i32_1 = arith.constant 0 : i32
    return %arg0, %c0_i32, %c0_i32_0 : i32, i32, i32
  }
}

</mosaic_0001>

<bundles_post_ra>
// kernel: tpu_custom_call.1
= control target key start
LH: loop header
LB: loop body
LE: loop exit
PB: predicated region body
PF: predicated region fallthrough
CT: control target
= control target key end

     0   :  { %10 = vsyncpa [#allocation4], 0  ;;  %s762_s0 = inlined_call_operand.vmem [shape: f32[2,8,32], index: 0, kind: input, shape index: {}]   ;;  %s763_s1 = inlined_call_operand.vmem [shape: f32[2,2,8,8], index: 1, kind: input, shape index: {}]   ;;  %s764_s2 = inlined_call_operand.vmem [shape: f32[32,16], index: 2, kind: input, shape index: {}]   ;;  %s765_s3 = inlined_call_operand.vmem [shape: f32[32,16], index: 3, kind: input, shape index: {}]   ;;  %s766_s4 = inlined_call_operand.vmem [shape: f32[1,1,16], index: 4, kind: input, shape index: {}]   ;;  %s767_s5 = inlined_call_operand.hbm [shape: f32[2,8,16], index: 5, kind: output, shape index: {}]  }
   0x1   :  { %12 = vsyncpa [#allocation4 + $0x1], 0  ;;  %s635_s18 = smov 0   ;;  %s637_s19 = smov 0  }
   0x2   :  { %s639_s20 = smov 0   ;;  %s641_s21 = smov 0  }
   0x3 LB: > { %s656_s22 = sadd.s32 4294967295, %s603_s21   ;;  %s483_s23 = sadd.s32 4294967294, %s603_s21   ;;  %s603_s21 = sphi %s641_s21, %s773_s21   ;;  %s599_s20 = sphi %s639_s20, %s772_s20   ;;  %s595_s19 = sphi %s637_s19, %s771_s19   ;;  %s591_s18 = sphi %s635_s18, %s770_s18  }
   0x4   : > { %s660_s24 = sadd.s32 1, %s603_s21   ;;  %s51_s25 = sadd.s32 1, %s599_s20 }
   0x5   : > { %s48_s26 = ssub.s32 %s603_s21, %s660_s24  ;;  %p58_p0 = scmp.ne.s32.totalorder %s599_s20, %s595_s19 }
   0x6   : > { %p49_p1 = scmp.eq.s32.totalorder %s48_s26, 0  ;;  %p59_p2 = scmp.eq.s32.totalorder %s603_s21, 0 }
   0x7   : > { %p151_p3 = scmp.eq.s32.totalorder %s656_s22, 1  ;;  %p156_p4 = scmp.ne.s32.totalorder %s595_s19, %s591_s18 }
   0x8   : > { %s672_s27 = scalar_select %p49_p1, %s599_s20, %s51_s25  }
   0x9   : > { %p60_p5 = por %p59_p2, %p58_p0  ;;  %p674_p6 = por %p151_p3, %p58_p0 }
   0xa   : > { %p157_p7 = scmp.eq.s32.totalorder %s483_s23, 1  ;;  %p485_p9 = scmp.ge.s32.totalorder %s603_s21, 2 }
   0xc   : > { %p678_p8 = por %p157_p7, %p156_p4  ;;  %182 = sbr.rel (%p485_p9) target bundleno = 23 (0x17), region = 28 }
  0x11   : > { %192 = sbr.rel (!%p60_p5) target bundleno = 23 (0x17), region = 36  ;;  %s194_s30 = sand.u32 (%p60_p5), 1, %s599_s20  }
  0x12   : > { %s487_s6 = sshll.u32 (%p60_p5), %s603_s21, 3  ;;  %s486_s7 = sshll.u32 (%p60_p5), %s194_s30, 4 }
  0x13   : > { %s198_s10 = scalar_lea.vmem (%p60_p5), %s763_s1, %s487_s6  ;;  %s196_s11 = scalar_lea.vmem (%p60_p5), [#allocation2], %s486_s7 }
  0x14   : > { %v229_v0 = vld [vmem:[%s198_s10] sm:$0xff] (%p60_p5)  ;;  %v231_v1 = vld [vmem:[%s198_s10 + $0x10] sm:$0xff] (%p60_p5) }
  0x15   : > { %230 = vst [vmem:[%s196_s11] sm:$0xff] (%p60_p5), %v229_v0 }
  0x16   : > { %232 = vst [vmem:[%s196_s11 + $0x8] sm:$0xff] %v231_v1 }
  0x17 PF: > { %p488_p10 = scmp.ge.s32.totalorder %s603_s21, 1  ;;  %p237_p11 = scmp.lt.s32.totalorder %s603_s21, 3 }
  0x19   : > { %p238_p12 = pnand %p488_p10, %p237_p11 }
  0x1a   : > { %p275_p13 = scmp.lt.s32.totalorder (!%p238_p12), %s656_s22, 1  ;;  %s722_s17 = sand.u32 (!%p238_p12), 1, %s595_s19  }
  0x1b   : > { %241 = sbr.rel (%p238_p12) target bundleno = 309 (0x135), region = 74  ;;  %s489_s23 = sshll.u32 (!%p238_p12), %s722_s17, 4 }
  0x1c   : > { %s246_s25 = scalar_lea.vmem (!%p238_p12), [#allocation2], %s489_s23  ;;  %s490_s26 = sshll.u32 (!%p238_p12), %s722_s17, 3 }
  0x1d   : > { %s498_s30 = sshll.u32 (!%p238_p12), %s656_s22, 3  ;;  %s274_s11 = scalar_lea.vmem (!%p238_p12), [#allocation3], %s490_s26 }
  0x1e   : > { %s401_s10 = scalar_lea.hbm (!%p238_p12), %s767_s5, %s498_s30  ;;  %s403_s12 = sshll.u32 (!%p238_p12), %s274_s11, 4  ;;  %s404_s12 = int_to_ptr.vmem [resolvable:$true] %s403_s12 }
  0x20   : > { %v283_v2 = vld [vmem:[%s764_s2 + $0x18] sm:$0xff]  ;;  %v282_v4 = vld [vmem:[%s764_s2 + $0x10] sm:$0xff]  ;;  %v281_v6 = vld [vmem:[%s764_s2 + $0x8] sm:$0xff]  ;;  %s276_s8 = scalar_select %p275_p13, %s656_s22, 1  ;;  %vm284_vm0 = vcmask 261120   ;;  %vm335_vm1 = vcmask 64512  }
  0x21   : > { %v311_v3 = vld [vmem:[%s765_s3 + $0x18] sm:$0xff]  ;;  %300 = vmatpush.msra.mxu0 %v283_v2  ;;  %v310_v5 = vld [vmem:[%s765_s3 + $0x10] sm:$0xff]  ;;  %v309_v7 = vld [vmem:[%s765_s3 + $0x8] sm:$0xff]  ;;  %vm388_vm2 = vcmask 130048   ;;  %s391_s22 = scalar_lea.sflag [#allocation4], %s722_s17 }
  0x22   : > { %324 = vmatpush.msra.mxu1 %v311_v3  ;;  %v280_v8 = vld [vmem:[%s764_s2] sm:$0xff]  ;;  %s491_s13 = sshll.u32 %s276_s8, 3  ;;  %v494_v11 = vld [vmem:[%s246_s25 + $0x8] sm:$0xff] }
  0x23   : > { %301 = vmatpush.msra.mxu0 %v282_v4  ;;  %v308_v9 = vld [vmem:[%s765_s3] sm:$0xff]  ;;  %s278_s16 = scalar_lea.vmem %s762_s0, %s491_s13  ;;  %s405_s13 = sshll.u32 %s401_s10, 4  ;;  %s406_s13 = int_to_ptr.hbm [resolvable:$true] %s405_s13 }
  0x24   : > { %325 = vmatpush.msra.mxu1 %v310_v5  ;;  %v279_v10 = vld [vmem:[%s278_s16] sm:$0xff]  ;;  %s555_s14 = sshra.s32 %s406_s13, 4  ;;  %s556_s14 = int_to_ptr.hbm [resolvable:$true] %s555_s14 }
  0x25   : > { %302 = vmatpush.msra.mxu0 %v281_v6  ;;  %v332_v12 = vld [vmem:[%s246_s25] sm:$0xff]  ;;  %s557_s15 = scalar_lea.hbm %s556_s14, 8  ;;  %s561_s25 = scalar_lea.hbm %s767_s5, 16 }
  0x26   : > { %326 = vmatpush.msra.mxu1 %v309_v7  ;;  %v540_v15 = vld [vmem:[%s766_s4] ss:$0 sm:$0xff]  ;;  %p558_p0 = scmp.ne.s32.totalorder %s556_s14, %s557_s15  ;;  %p562_p3 = scmp.lt.s32.totalorder %s556_s14, %s767_s5 }
  0x27   : > { %303 = vmatpush.msra.mxu0 %v280_v8  ;;  %p563_p4 = scmp.lt.s32.totalorder %s561_s25, %s557_s15 }
  0x28   : > { %327 = vmatpush.msra.mxu1 %v308_v9  ;;  %492 = vmatmul.msk.f32.vlgmr.msra.gmra.mxu0 %vm284_vm0, %v279_v10  ;;  %p559_p1 = pnand %p558_p0, %p674_p6 }
  0x29   : > { %493 = vmatmul.msk.f32.vlgmr.msra.gmra.mxu1 %vm284_vm0, %v279_v10  ;;  %p564_p5 = por %p563_p4, %p562_p3 }
  0x2a   : > { %p560_p2 = pneg %p559_p1 }
  0x2c   : > { %p565_p7 = pnand %p564_p5, %p560_p2 }
  0xa5   : > { %v305_v13 = vpop.f32.mrf.mxu0 }
  0xa6   : > { %v329_v14 = vpop.f32.mrf.mxu1  ;;  %377 = vmatpush.msra.mxu3 %v305_v13 }
  0xa7   : > { %354 = vmatpush.msra.mxu2 %v329_v14  ;;  %496 = vmatmul.msk.f32.vlgmr.msra.gmra.mxu3 %vm335_vm1, %v332_v12 }
  0xa8   : > { %495 = vmatmul.msk.f32.vlgmr.msra.gmra.mxu2 %vm335_vm1, %v494_v11 }
 0x12a   : > { %v379_v17 = vpop.f32.mrf.mxu3 }
 0x12b   : > { %v356_v16 = vpop.f32.mrf.mxu2 }
 0x12c   : > { %v380_v18 = vadd.f32 %v379_v17, %v356_v16 }
 0x12e   : > { %v386_v19 = vadd.f32 %v540_v15, %v380_v18 }
 0x130   : > { %v387_v20 = vmax.f32 %v386_v19, 0.0 }
 0x132   : > { %389 = vst.msk [vmem:[%s274_s11] sm:$0xff] %vm388_vm2, %v387_v20 }
 0x133   : > { %568 = shalt.err (!%p565_p7)
}
 0x134   : > { %501 = dma.vmem_to_hbm [thread:$0]  (%p674_p6), %s404_s12, 128, %s406_s13, %s391_s22  }
 0x135 PF: > { %s417_s17 = sand.u32 1, %s591_s18   ;;  %p504_p10 = pnand %p485_p9, %p678_p8 }
 0x136   : > { %s418_s6 = scalar_lea.sflag [#allocation4], %s417_s17 }
 0x137   : > { %p505_p11 = pneg %p504_p10 }
 0x139   : > { %586 = dma.done.wait (%p505_p11), %s418_s6, 128  }
 0x13a   : > { %588 = vsyncadd (%p505_p11), %s418_s6, 4294967168  ;;  %p15_p12 = scmp.ge.s32.totalorder %s660_s24, 4   ;;  %s770_s18 = smov %s595_s19 }
 0x13b   : > { %s771_s19 = smov %s599_s20  ;;  %s772_s20 = smov %s672_s27 }
 0x13c   : > { %s773_s21 = smov %s660_s24  ;;  %17 = sbr.rel (!%p15_p12) target bundleno = 3 (0x3), region = 122 }
 0x141   :  { %424 = vsyncpa [#allocation4], 1 }
 0x142   :  { %426 = vsyncpa [#allocation4 + $0x1], 1 }

</bundles_post_ra>
